<compile_context>
chip_gen: v7x
topology: tpu7x:2x2x1
jax: 0.10.0
libtpu: 0.0.40
codegen_flags: <defaults>
</compile_context>

<pallas_src>
import functools

import jax
import jax.numpy as jnp
import numpy as np
from jax import lax
from jax.experimental import pallas as pl
from jax.experimental.pallas import tpu as pltpu


def _round_up(x, m):
    return (x + m - 1) // m * m


def _pick_tile(n, cap=8):
    """Tile along a sublane-ish dim: full dim if small, else 8 (f32 sublane)."""
    if n <= cap:
        return n
    if n % 8 == 0:
        return 8
    return n  # fall back to un-tiled (keeps the (8,128) BlockSpec rule happy)


def _compl_mul_kernel(xr_ref, xi_ref, wr_ref, wi_ref, or_ref, oi_ref):
    """One output tile of out[b, o, m] = sum_i x[i, b, m] * w[i, o, m] (complex).

    Kernel-view shapes (mode-block grid axis squeezed away):
      xr_ref/xi_ref : (Cin, TB, TM)
      wr_ref/wi_ref : (Cin, TO, TM)
      or_ref/oi_ref : (TB, TO, TM)
    TM is the lane dim (multiple of 128) -> unmasked vld/vst.  The Cin
    reduction is carried in registers; outputs are written exactly once.
    """
    cin, tb, tm = xr_ref.shape
    to = wr_ref.shape[1]

    def body(i, carry):
        acc_r, acc_i = carry
        xr = xr_ref[i][:, None, :]            # (TB, 1, TM)
        xi = xi_ref[i][:, None, :]
        wr = wr_ref[i][None, :, :]            # (1, TO, TM)
        wi = wi_ref[i][None, :, :]
        # Gauss 3-multiply complex product:
        #   k1 = wr*(xr+xi); k2 = xr*(wi-wr); k3 = xi*(wr+wi)
        #   real = k1 - k3 ; imag = k1 + k2
        k1 = wr * (xr + xi)                   # (TB, TO, TM)
        k2 = xr * (wi - wr)
        k3 = xi * (wr + wi)
        return acc_r + (k1 - k3), acc_i + (k1 + k2)

    zero = jnp.zeros((tb, to, tm), jnp.float32)
    acc_r, acc_i = lax.fori_loop(0, cin, body, (zero, zero), unroll=4)
    or_ref[...] = acc_r                       # single store per output tile
    oi_ref[...] = acc_i


def pack_spectral_weights(weights1, weights2):
    """Static-parameter preprocessing, hoisted out of the per-forward path.

    (Cin, Cout, m1, m2) complex x2  ->  (wr, wi) each (2, Cin, Cout, Mp) f32,
    mode dim flattened and lane-padded to a multiple of 128.
    """
    Cin, Cout, m1, m2 = weights1.shape
    M = m1 * m2
    Mp = _round_up(M, 128)
    w = jnp.stack([weights1, weights2], axis=0).reshape(2, Cin, Cout, M)
    wr = jnp.real(w).astype(jnp.float32)
    wi = jnp.imag(w).astype(jnp.float32)
    if Mp != M:
        pad = ((0, 0), (0, 0), (0, 0), (0, Mp - M))
        wr = jnp.pad(wr, pad)
        wi = jnp.pad(wi, pad)
    return wr, wi


def spectral_conv2d_fast(x, weights1, weights2, modes1, modes2, packed_weights=None):
    """Forward pass of SpectralConv2d_fast.  x: (B, Cin, H, W) float32."""
    B, Cin, H, W = x.shape
    Cout = weights1.shape[1]
    Wf = W // 2 + 1
    M = modes1 * modes2
    Mp = _round_up(M, 128)

    if packed_weights is None:
        packed_weights = pack_spectral_weights(weights1, weights2)
    wr, wi = packed_weights

    # TODO(synk): rfft2 / irfft2 have no Pallas equivalent; done with XLA FFT.
    x_ft = jnp.fft.rfft2(x)                                   # (B, Cin, H, Wf) complex64

    # Retained-mode slab -> (2, Cin, B, Mp) f32 re/im, lane dim padded to 128.
    xb = jnp.stack(
        [x_ft[:, :, :modes1, :modes2], x_ft[:, :, H - modes1:, :modes2]], axis=0)
    xb = xb.transpose(0, 2, 1, 3, 4).reshape(2, Cin, B, M)
    xr, xi = jnp.real(xb), jnp.imag(xb)
    if Mp != M:
        pad = ((0, 0), (0, 0), (0, 0), (0, Mp - M))
        xr, xi = jnp.pad(xr, pad), jnp.pad(xi, pad)

    # Tile sizes: register-accumulator tile ~ (TB<=8) x (TO<=8) x 128 lanes
    # (re+im ~ 16 vregs at 8x8x128).  Tiles this small fit the scoped-VMEM
    # defaults of v5e/v6e/v7x with headroom, so one config serves all gens.
    TB = _pick_tile(B)
    TO = _pick_tile(Cout)
    TM = 128
    n_b, n_o, n_m = B // TB, Cout // TO, Mp // TM

    # Grid order (g, b, m, o): the x index map ignores o, so the x block stays
    # resident across the innermost Cout loop while weight/output tiles stream.
    blk_x = pl.BlockSpec((pl.Squeezed(), Cin, TB, TM),
                         lambda g, b, m, o: (g, 0, b, m))
    blk_w = pl.BlockSpec((pl.Squeezed(), Cin, TO, TM),
                         lambda g, b, m, o: (g, 0, o, m))
    blk_o = pl.BlockSpec((pl.Squeezed(), TB, TO, TM),
                         lambda g, b, m, o: (g, b, o, m))

    # Explicit scoped-VMEM budget: double-buffered re+im tiles + headroom.
    # (If weight DMA is still exposed after profiling, bump blk_w to
    #  pipeline_mode=pl.Buffered(3); tiles are small so extra buffers are cheap.)
    step_bytes = 2 * 2 * 4 * (Cin * TB * TM + Cin * TO * TM + TB * TO * TM)
    vmem_limit = int(min(64 * 1024 * 1024, max(4 * step_bytes, 16 * 1024 * 1024)))

    out_r, out_i = pl.pallas_call(
        _compl_mul_kernel,
        out_shape=(
            jax.ShapeDtypeStruct((2, B, Cout, Mp), jnp.float32),
            jax.ShapeDtypeStruct((2, B, Cout, Mp), jnp.float32),
        ),
        grid=(2, n_b, n_m, n_o),
        in_specs=[blk_x, blk_x, blk_w, blk_w],
        out_specs=(blk_o, blk_o),
        compiler_params=pltpu.CompilerParams(
            dimension_semantics=("parallel", "parallel", "parallel", "parallel"),
            vmem_limit_bytes=vmem_limit),
    )(xr, xi, wr, wi)

    # (2, B, Cout, Mp) -> drop lane padding, reshape directly to mode grid.
    out = jax.lax.complex(out_r[..., :M], out_i[..., :M])
    out = out.reshape(2, B, Cout, modes1, modes2)
    out1, out2 = out[0], out[1]

    # Assemble the full frequency slab without a zeros+scatter round-trip.
    pad_w = ((0, 0), (0, 0), (0, 0), (0, Wf - modes2))
    if H >= 2 * modes1:
        top = jnp.pad(out1, pad_w)                            # (B, Cout, modes1, Wf)
        bot = jnp.pad(out2, pad_w)
        mid = jnp.zeros((B, Cout, H - 2 * modes1, Wf), dtype=out1.dtype)
        out_ft = jnp.concatenate([top, mid, bot], axis=2)     # (B, Cout, H, Wf)
    else:  # overlapping mode blocks: fall back to PyTorch write-order semantics
        out_ft = jnp.zeros((B, Cout, H, Wf), dtype=out1.dtype)
        out_ft = out_ft.at[:, :, :modes1, :modes2].set(out1)
        out_ft = out_ft.at[:, :, H - modes1:, :modes2].set(out2)

    y = jnp.fft.irfft2(out_ft, s=(H, W))                      # (B, Cout, H, W)
    return y.astype(jnp.float32)


def _reference(x, weights1, weights2, modes1, modes2):
    """Pure-JAX reference matching the PyTorch module exactly."""
    B, Cin, H, W = x.shape
    Cout = weights1.shape[1]
    Wf = W // 2 + 1
    x_ft = jnp.fft.rfft2(x)
    mul = lambda a, w: jnp.einsum('bixy,ioxy->boxy', a, w)
    out_ft = jnp.zeros((B, Cout, H, Wf), dtype=jnp.complex64)
    out_ft = out_ft.at[:, :, :modes1, :modes2].set(
        mul(x_ft[:, :, :modes1, :modes2], weights1))
    out_ft = out_ft.at[:, :, H - modes1:, :modes2].set(
        mul(x_ft[:, :, H - modes1:, :modes2], weights2))
    return jnp.fft.irfft2(out_ft, s=(H, W)).astype(jnp.float32)


if __name__ == "__main__":
    # NOTE: toy shapes for correctness only.  For perf measurement use B and
    # Cout that are multiples of 8 (f32 sublane) to avoid masked sublane ops.
    B, Cin, Cout, H, W = 2, 4, 4, 16, 16
    modes1, modes2 = 4, 4

    key = jax.random.PRNGKey(0)
    kx, k1r, k1i, k2r, k2i = jax.random.split(key, 5)

    x = jax.random.normal(kx, (B, Cin, H, W), dtype=jnp.float32)

    scale = 1.0 / (Cin * Cout)
    # torch.rand(..., dtype=torch.cfloat): real & imag each uniform in [0, 1).
    weights1 = (scale * (jax.random.uniform(k1r, (Cin, Cout, modes1, modes2), jnp.float32)
                         + 1j * jax.random.uniform(k1i, (Cin, Cout, modes1, modes2), jnp.float32))
                ).astype(jnp.complex64)
    weights2 = (scale * (jax.random.uniform(k2r, (Cin, Cout, modes1, modes2), jnp.float32)
                         + 1j * jax.random.uniform(k2i, (Cin, Cout, modes1, modes2), jnp.float32))
                ).astype(jnp.complex64)

    # Weights are static parameters: split/flatten/pad them once, up front.
    packed = jax.tree_util.tree_map(jax.block_until_ready,
                                    pack_spectral_weights(weights1, weights2))

    fwd = jax.jit(functools.partial(spectral_conv2d_fast,
                                    modes1=modes1, modes2=modes2))
    y = jax.block_until_ready(fwd(x, weights1, weights2, packed_weights=packed))

    y_ref = jax.block_until_ready(_reference(x, weights1, weights2, modes1, modes2))
    assert y.shape == (B, Cout, H, W)
    np.testing.assert_allclose(np.asarray(y), np.asarray(y_ref), atol=1e-4, rtol=1e-4)

    print("KERNEL_OK")
</pallas_src>

<mosaic_0001>
module attributes {stable_mosaic.version = 11 : i64} {
  func.func @_compl_mul_kernel(%arg0: i32, %arg1: i32, %arg2: i32, %arg3: i32, %arg4: memref<1x4x2x128xf32, #tpu.memory_space<vmem>>, %arg5: memref<1x4x2x128xf32, #tpu.memory_space<vmem>>, %arg6: memref<1x4x4x128xf32, #tpu.memory_space<vmem>>, %arg7: memref<1x4x4x128xf32, #tpu.memory_space<vmem>>, %arg8: memref<1x2x4x128xf32, #tpu.memory_space<vmem>>, %arg9: memref<1x2x4x128xf32, #tpu.memory_space<vmem>>) attributes {dimension_semantics = [#tpu.dimension_semantics<parallel>, #tpu.dimension_semantics<parallel>, #tpu.dimension_semantics<parallel>, #tpu.dimension_semantics<parallel>], iteration_bounds = array<i64: 2, 1, 1, 1>, scalar_prefetch = 0 : i64, scratch_operands = 0 : i64, tpu.core_type = #tpu.core_type<tc>, window_params = [{transform_indices = @transform_0, window_bounds = array<i64: 1, 4, 2, 128>}, {transform_indices = @transform_1, window_bounds = array<i64: 1, 4, 2, 128>}, {transform_indices = @transform_2, window_bounds = array<i64: 1, 4, 4, 128>}, {transform_indices = @transform_3, window_bounds = array<i64: 1, 4, 4, 128>}, {transform_indices = @transform_4, window_bounds = array<i64: 1, 2, 4, 128>}, {transform_indices = @transform_5, window_bounds = array<i64: 1, 2, 4, 128>}]} {
    %cst = arith.constant 0.000000e+00 : f32
    %0 = vector.broadcast %cst : f32 to vector<2x4x128xf32>
    %c0_i32 = arith.constant 0 : i32
    %c0 = arith.constant 0 : index
    %1 = arith.index_cast %c0_i32 : i32 to index
    %c0_0 = arith.constant 0 : index
    %c0_1 = arith.constant 0 : index
    %2 = vector.load %arg4[%c0, %1, %c0_0, %c0_1] : memref<1x4x2x128xf32, #tpu.memory_space<vmem>>, vector<1x1x2x128xf32>
    %3 = vector.shape_cast %2 : vector<1x1x2x128xf32> to vector<2x128xf32>
    %4 = vector.shape_cast %3 : vector<2x128xf32> to vector<2x1x128xf32>
    %c0_2 = arith.constant 0 : index
    %5 = arith.index_cast %c0_i32 : i32 to index
    %c0_3 = arith.constant 0 : index
    %c0_4 = arith.constant 0 : index
    %6 = vector.load %arg5[%c0_2, %5, %c0_3, %c0_4] : memref<1x4x2x128xf32, #tpu.memory_space<vmem>>, vector<1x1x2x128xf32>
    %7 = vector.shape_cast %6 : vector<1x1x2x128xf32> to vector<2x128xf32>
    %8 = vector.shape_cast %7 : vector<2x128xf32> to vector<2x1x128xf32>
    %c0_5 = arith.constant 0 : index
    %9 = arith.index_cast %c0_i32 : i32 to index
    %c0_6 = arith.constant 0 : index
    %c0_7 = arith.constant 0 : index
    %10 = vector.load %arg6[%c0_5, %9, %c0_6, %c0_7] : memref<1x4x4x128xf32, #tpu.memory_space<vmem>>, vector<1x1x4x128xf32>
    %11 = vector.shape_cast %10 : vector<1x1x4x128xf32> to vector<4x128xf32>
    %12 = vector.shape_cast %11 : vector<4x128xf32> to vector<1x4x128xf32>
    %c0_8 = arith.constant 0 : index
    %13 = arith.index_cast %c0_i32 : i32 to index
    %c0_9 = arith.constant 0 : index
    %c0_10 = arith.constant 0 : index
    %14 = vector.load %arg7[%c0_8, %13, %c0_9, %c0_10] : memref<1x4x4x128xf32, #tpu.memory_space<vmem>>, vector<1x1x4x128xf32>
    %15 = vector.shape_cast %14 : vector<1x1x4x128xf32> to vector<4x128xf32>
    %16 = vector.shape_cast %15 : vector<4x128xf32> to vector<1x4x128xf32>
    %17 = arith.addf %4, %8 : vector<2x1x128xf32>
    %18 = vector.broadcast %12 : vector<1x4x128xf32> to vector<2x4x128xf32>
    %19 = vector.broadcast %17 : vector<2x1x128xf32> to vector<2x4x128xf32>
    %20 = arith.mulf %18, %19 : vector<2x4x128xf32>
    %21 = arith.subf %16, %12 : vector<1x4x128xf32>
    %22 = vector.broadcast %4 : vector<2x1x128xf32> to vector<2x4x128xf32>
    %23 = vector.broadcast %21 : vector<1x4x128xf32> to vector<2x4x128xf32>
    %24 = arith.mulf %22, %23 : vector<2x4x128xf32>
    %25 = arith.addf %12, %16 : vector<1x4x128xf32>
    %26 = vector.broadcast %8 : vector<2x1x128xf32> to vector<2x4x128xf32>
    %27 = vector.broadcast %25 : vector<1x4x128xf32> to vector<2x4x128xf32>
    %28 = arith.mulf %26, %27 : vector<2x4x128xf32>
    %29 = arith.subf %20, %28 : vector<2x4x128xf32>
    %30 = arith.addf %0, %29 : vector<2x4x128xf32>
    %31 = arith.addf %20, %24 : vector<2x4x128xf32>
    %32 = arith.addf %0, %31 : vector<2x4x128xf32>
    %c1_i32 = arith.constant 1 : i32
    %c0_11 = arith.constant 0 : index
    %33 = arith.index_cast %c1_i32 : i32 to index
    %c0_12 = arith.constant 0 : index
    %c0_13 = arith.constant 0 : index
    %34 = vector.load %arg4[%c0_11, %33, %c0_12, %c0_13] : memref<1x4x2x128xf32, #tpu.memory_space<vmem>>, vector<1x1x2x128xf32>
    %35 = vector.shape_cast %34 : vector<1x1x2x128xf32> to vector<2x128xf32>
    %36 = vector.shape_cast %35 : vector<2x128xf32> to vector<2x1x128xf32>
    %c0_14 = arith.constant 0 : index
    %37 = arith.index_cast %c1_i32 : i32 to index
    %c0_15 = arith.constant 0 : index
    %c0_16 = arith.constant 0 : index
    %38 = vector.load %arg5[%c0_14, %37, %c0_15, %c0_16] : memref<1x4x2x128xf32, #tpu.memory_space<vmem>>, vector<1x1x2x128xf32>
    %39 = vector.shape_cast %38 : vector<1x1x2x128xf32> to vector<2x128xf32>
    %40 = vector.shape_cast %39 : vector<2x128xf32> to vector<2x1x128xf32>
    %c0_17 = arith.constant 0 : index
    %41 = arith.index_cast %c1_i32 : i32 to index
    %c0_18 = arith.constant 0 : index
    %c0_19 = arith.constant 0 : index
    %42 = vector.load %arg6[%c0_17, %41, %c0_18, %c0_19] : memref<1x4x4x128xf32, #tpu.memory_space<vmem>>, vector<1x1x4x128xf32>
    %43 = vector.shape_cast %42 : vector<1x1x4x128xf32> to vector<4x128xf32>
    %44 = vector.shape_cast %43 : vector<4x128xf32> to vector<1x4x128xf32>
    %c0_20 = arith.constant 0 : index
    %45 = arith.index_cast %c1_i32 : i32 to index
    %c0_21 = arith.constant 0 : index
    %c0_22 = arith.constant 0 : index
    %46 = vector.load %arg7[%c0_20, %45, %c0_21, %c0_22] : memref<1x4x4x128xf32, #tpu.memory_space<vmem>>, vector<1x1x4x128xf32>
    %47 = vector.shape_cast %46 : vector<1x1x4x128xf32> to vector<4x128xf32>
    %48 = vector.shape_cast %47 : vector<4x128xf32> to vector<1x4x128xf32>
    %49 = arith.addf %36, %40 : vector<2x1x128xf32>
    %50 = vector.broadcast %44 : vector<1x4x128xf32> to vector<2x4x128xf32>
    %51 = vector.broadcast %49 : vector<2x1x128xf32> to vector<2x4x128xf32>
    %52 = arith.mulf %50, %51 : vector<2x4x128xf32>
    %53 = arith.subf %48, %44 : vector<1x4x128xf32>
    %54 = vector.broadcast %36 : vector<2x1x128xf32> to vector<2x4x128xf32>
    %55 = vector.broadcast %53 : vector<1x4x128xf32> to vector<2x4x128xf32>
    %56 = arith.mulf %54, %55 : vector<2x4x128xf32>
    %57 = arith.addf %44, %48 : vector<1x4x128xf32>
    %58 = vector.broadcast %40 : vector<2x1x128xf32> to vector<2x4x128xf32>
    %59 = vector.broadcast %57 : vector<1x4x128xf32> to vector<2x4x128xf32>
    %60 = arith.mulf %58, %59 : vector<2x4x128xf32>
    %61 = arith.subf %52, %60 : vector<2x4x128xf32>
    %62 = arith.addf %30, %61 : vector<2x4x128xf32>
    %63 = arith.addf %52, %56 : vector<2x4x128xf32>
    %64 = arith.addf %32, %63 : vector<2x4x128xf32>
    %c2_i32 = arith.constant 2 : i32
    %c0_23 = arith.constant 0 : index
    %65 = arith.index_cast %c2_i32 : i32 to index
    %c0_24 = arith.constant 0 : index
    %c0_25 = arith.constant 0 : index
    %66 = vector.load %arg4[%c0_23, %65, %c0_24, %c0_25] : memref<1x4x2x128xf32, #tpu.memory_space<vmem>>, vector<1x1x2x128xf32>
    %67 = vector.shape_cast %66 : vector<1x1x2x128xf32> to vector<2x128xf32>
    %68 = vector.shape_cast %67 : vector<2x128xf32> to vector<2x1x128xf32>
    %c0_26 = arith.constant 0 : index
    %69 = arith.index_cast %c2_i32 : i32 to index
    %c0_27 = arith.constant 0 : index
    %c0_28 = arith.constant 0 : index
    %70 = vector.load %arg5[%c0_26, %69, %c0_27, %c0_28] : memref<1x4x2x128xf32, #tpu.memory_space<vmem>>, vector<1x1x2x128xf32>
    %71 = vector.shape_cast %70 : vector<1x1x2x128xf32> to vector<2x128xf32>
    %72 = vector.shape_cast %71 : vector<2x128xf32> to vector<2x1x128xf32>
    %c0_29 = arith.constant 0 : index
    %73 = arith.index_cast %c2_i32 : i32 to index
    %c0_30 = arith.constant 0 : index
    %c0_31 = arith.constant 0 : index
    %74 = vector.load %arg6[%c0_29, %73, %c0_30, %c0_31] : memref<1x4x4x128xf32, #tpu.memory_space<vmem>>, vector<1x1x4x128xf32>
    %75 = vector.shape_cast %74 : vector<1x1x4x128xf32> to vector<4x128xf32>
    %76 = vector.shape_cast %75 : vector<4x128xf32> to vector<1x4x128xf32>
    %c0_32 = arith.constant 0 : index
    %77 = arith.index_cast %c2_i32 : i32 to index
    %c0_33 = arith.constant 0 : index
    %c0_34 = arith.constant 0 : index
    %78 = vector.load %arg7[%c0_32, %77, %c0_33, %c0_34] : memref<1x4x4x128xf32, #tpu.memory_space<vmem>>, vector<1x1x4x128xf32>
    %79 = vector.shape_cast %78 : vector<1x1x4x128xf32> to vector<4x128xf32>
    %80 = vector.shape_cast %79 : vector<4x128xf32> to vector<1x4x128xf32>
    %81 = arith.addf %68, %72 : vector<2x1x128xf32>
    %82 = vector.broadcast %76 : vector<1x4x128xf32> to vector<2x4x128xf32>
    %83 = vector.broadcast %81 : vector<2x1x128xf32> to vector<2x4x128xf32>
    %84 = arith.mulf %82, %83 : vector<2x4x128xf32>
    %85 = arith.subf %80, %76 : vector<1x4x128xf32>
    %86 = vector.broadcast %68 : vector<2x1x128xf32> to vector<2x4x128xf32>
    %87 = vector.broadcast %85 : vector<1x4x128xf32> to vector<2x4x128xf32>
    %88 = arith.mulf %86, %87 : vector<2x4x128xf32>
    %89 = arith.addf %76, %80 : vector<1x4x128xf32>
    %90 = vector.broadcast %72 : vector<2x1x128xf32> to vector<2x4x128xf32>
    %91 = vector.broadcast %89 : vector<1x4x128xf32> to vector<2x4x128xf32>
    %92 = arith.mulf %90, %91 : vector<2x4x128xf32>
    %93 = arith.subf %84, %92 : vector<2x4x128xf32>
    %94 = arith.addf %62, %93 : vector<2x4x128xf32>
    %95 = arith.addf %84, %88 : vector<2x4x128xf32>
    %96 = arith.addf %64, %95 : vector<2x4x128xf32>
    %c3_i32 = arith.constant 3 : i32
    %c0_35 = arith.constant 0 : index
    %97 = arith.index_cast %c3_i32 : i32 to index
    %c0_36 = arith.constant 0 : index
    %c0_37 = arith.constant 0 : index
    %98 = vector.load %arg4[%c0_35, %97, %c0_36, %c0_37] : memref<1x4x2x128xf32, #tpu.memory_space<vmem>>, vector<1x1x2x128xf32>
    %99 = vector.shape_cast %98 : vector<1x1x2x128xf32> to vector<2x128xf32>
    %100 = vector.shape_cast %99 : vector<2x128xf32> to vector<2x1x128xf32>
    %c0_38 = arith.constant 0 : index
    %101 = arith.index_cast %c3_i32 : i32 to index
    %c0_39 = arith.constant 0 : index
    %c0_40 = arith.constant 0 : index
    %102 = vector.load %arg5[%c0_38, %101, %c0_39, %c0_40] : memref<1x4x2x128xf32, #tpu.memory_space<vmem>>, vector<1x1x2x128xf32>
    %103 = vector.shape_cast %102 : vector<1x1x2x128xf32> to vector<2x128xf32>
    %104 = vector.shape_cast %103 : vector<2x128xf32> to vector<2x1x128xf32>
    %c0_41 = arith.constant 0 : index
    %105 = arith.index_cast %c3_i32 : i32 to index
    %c0_42 = arith.constant 0 : index
    %c0_43 = arith.constant 0 : index
    %106 = vector.load %arg6[%c0_41, %105, %c0_42, %c0_43] : memref<1x4x4x128xf32, #tpu.memory_space<vmem>>, vector<1x1x4x128xf32>
    %107 = vector.shape_cast %106 : vector<1x1x4x128xf32> to vector<4x128xf32>
    %108 = vector.shape_cast %107 : vector<4x128xf32> to vector<1x4x128xf32>
    %c0_44 = arith.constant 0 : index
    %109 = arith.index_cast %c3_i32 : i32 to index
    %c0_45 = arith.constant 0 : index
    %c0_46 = arith.constant 0 : index
    %110 = vector.load %arg7[%c0_44, %109, %c0_45, %c0_46] : memref<1x4x4x128xf32, #tpu.memory_space<vmem>>, vector<1x1x4x128xf32>
    %111 = vector.shape_cast %110 : vector<1x1x4x128xf32> to vector<4x128xf32>
    %112 = vector.shape_cast %111 : vector<4x128xf32> to vector<1x4x128xf32>
    %113 = arith.addf %100, %104 : vector<2x1x128xf32>
    %114 = vector.broadcast %108 : vector<1x4x128xf32> to vector<2x4x128xf32>
    %115 = vector.broadcast %113 : vector<2x1x128xf32> to vector<2x4x128xf32>
    %116 = arith.mulf %114, %115 : vector<2x4x128xf32>
    %117 = arith.subf %112, %108 : vector<1x4x128xf32>
    %118 = vector.broadcast %100 : vector<2x1x128xf32> to vector<2x4x128xf32>
    %119 = vector.broadcast %117 : vector<1x4x128xf32> to vector<2x4x128xf32>
    %120 = arith.mulf %118, %119 : vector<2x4x128xf32>
    %121 = arith.addf %108, %112 : vector<1x4x128xf32>
    %122 = vector.broadcast %104 : vector<2x1x128xf32> to vector<2x4x128xf32>
    %123 = vector.broadcast %121 : vector<1x4x128xf32> to vector<2x4x128xf32>
    %124 = arith.mulf %122, %123 : vector<2x4x128xf32>
    %125 = arith.subf %116, %124 : vector<2x4x128xf32>
    %126 = arith.addf %94, %125 : vector<2x4x128xf32>
    %127 = arith.addf %116, %120 : vector<2x4x128xf32>
    %128 = arith.addf %96, %127 : vector<2x4x128xf32>
    %c4_i32 = arith.constant 4 : i32
    %c0_47 = arith.constant 0 : index
    %c0_48 = arith.constant 0 : index
    %c0_49 = arith.constant 0 : index
    %c0_50 = arith.constant 0 : index
    %129 = vector.load %arg8[%c0_47, %c0_48, %c0_49, %c0_50] : memref<1x2x4x128xf32, #tpu.memory_space<vmem>>, vector<1x2x4x128xf32>
    %130 = vector.shape_cast %129 : vector<1x2x4x128xf32> to vector<2x4x128xf32>
    %131 = vector.shape_cast %126 : vector<2x4x128xf32> to vector<1x2x4x128xf32>
    tpu.vector_store %arg8[%c0_47, %c0_48, %c0_49, %c0_50], %131 {strides = array<i32>} : memref<1x2x4x128xf32, #tpu.memory_space<vmem>>, vector<1x2x4x128xf32>,
    %c0_51 = arith.constant 0 : index
    %c0_52 = arith.constant 0 : index
    %c0_53 = arith.constant 0 : index
    %c0_54 = arith.constant 0 : index
    %132 = vector.load %arg9[%c0_51, %c0_52, %c0_53, %c0_54] : memref<1x2x4x128xf32, #tpu.memory_space<vmem>>, vector<1x2x4x128xf32>
    %133 = vector.shape_cast %132 : vector<1x2x4x128xf32> to vector<2x4x128xf32>
    %134 = vector.shape_cast %128 : vector<2x4x128xf32> to vector<1x2x4x128xf32>
    tpu.vector_store %arg9[%c0_51, %c0_52, %c0_53, %c0_54], %134 {strides = array<i32>} : memref<1x2x4x128xf32, #tpu.memory_space<vmem>>, vector<1x2x4x128xf32>,
    return
  }
  func.func @transform_0(%arg0: i32, %arg1: i32, %arg2: i32, %arg3: i32) -> (i32, i32, i32, i32) {
    %c0_i32 = arith.constant 0 : i32
    %c0_i32_0 = arith.constant 0 : i32
    return %arg0, %c0_i32, %arg1, %arg2 : i32, i32, i32, i32
  }
  func.func @transform_1(%arg0: i32, %arg1: i32, %arg2: i32, %arg3: i32) -> (i32, i32, i32, i32) {
    %c0_i32 = arith.constant 0 : i32
    %c0_i32_0 = arith.constant 0 : i32
    return %arg0, %c0_i32, %arg1, %arg2 : i32, i32, i32, i32
  }
  func.func @transform_2(%arg0: i32, %arg1: i32, %arg2: i32, %arg3: i32) -> (i32, i32, i32, i32) {
    %c0_i32 = arith.constant 0 : i32
    %c0_i32_0 = arith.constant 0 : i32
    return %arg0, %c0_i32, %arg3, %arg2 : i32, i32, i32, i32
  }
  func.func @transform_3(%arg0: i32, %arg1: i32, %arg2: i32, %arg3: i32) -> (i32, i32, i32, i32) {
    %c0_i32 = arith.constant 0 : i32
    %c0_i32_0 = arith.constant 0 : i32
    return %arg0, %c0_i32, %arg3, %arg2 : i32, i32, i32, i32
  }
  func.func @transform_4(%arg0: i32, %arg1: i32, %arg2: i32, %arg3: i32) -> (i32, i32, i32, i32) {
    %c0_i32 = arith.constant 0 : i32
    return %arg0, %arg1, %arg3, %arg2 : i32, i32, i32, i32
  }
  func.func @transform_5(%arg0: i32, %arg1: i32, %arg2: i32, %arg3: i32) -> (i32, i32, i32, i32) {
    %c0_i32 = arith.constant 0 : i32
    return %arg0, %arg1, %arg3, %arg2 : i32, i32, i32, i32
  }
}

</mosaic_0001>

<bundles_post_ra>
// kernel: squeeze.0
= control target key start
LH: loop header
LB: loop body
LE: loop exit
PB: predicated region body
PF: predicated region fallthrough
CT: control target
= control target key end

     0   :  { %vm11_vm0 = vcmask 31744   ;;  %s107_s10 = smov 116   ;;  %s108_s11 = smov 120   ;;  %s157_s0 = inlined_call_operand.vmem [shape: f32[1,2,4,16], index: 0, kind: input, shape index: {}]   ;;  %s158_s1 = inlined_call_operand.vmem [shape: f32[2,4,4,4], index: 1, kind: output, shape index: {}]  }
   0x1   :  { %v95_v0 = vld [vmem:[%s157_s0 + $0x4] sm:$0xf]  ;;  %v8_v1 = vld [vmem:[%s157_s0] sm:$0xf]  ;;  %s106_s0 = smov 124  }
   0x2   :  { %7 = vst [vmem:[#allocation1 + $0x8] sm:$0xf] %v95_v0  ;;  %9 = vst [vmem:[#allocation1] sm:$0xf] %v8_v1 }
   0x9   :  { %v10_v2 = vld [vmem:[#allocation1] sm:$0xf]   ;;  %v14_v4 = vld [vmem:[#allocation1 + $0x8] sm:$0xf]  }
   0xa   :  { %v18_v3 = vld.sshfl [vmem:[#allocation1] sm:$0xff pattern:$0xba983210]   ;;  %12 = vst.msk [vmem:[#allocation0] ss:$8 sm:$0xf] %vm11_vm0, %v10_v2  }
   0xb   :  { %19 = vrot.lane.b32.xlu0 %v18_v3, %s106_s0  ;;  %35 = vrot.lane.b32.xlu1 %v18_v3, %s107_s10  ;;  %17 = vst.msk [vmem:[#allocation0 + $0x20] ss:$8 sm:$0xf] %vm11_vm0, %v14_v4  }
   0xf   :  { %27 = vrot.lane.b32.xlu0 %v18_v3, %s108_s11 }
  0x7d   :  { %v20_v5 = vpop.permute.xlu0 %19   ;;  %v36_v6 = vpop.permute.xlu1 %35  }
  0x7e   :  { %23 = vst.msk [vmem:[#allocation0 + $0x1] ss:$8 sm:$0xf] %vm11_vm0, %v20_v5   ;;  %25 = vst.msk [vmem:[#allocation0 + $0x1] ss:$8 sm:$0xf0] %vm11_vm0, %v20_v5  }
  0x7f   :  { %39 = vst.msk [vmem:[#allocation0 + $0x3] ss:$8 sm:$0xf] %vm11_vm0, %v36_v6   ;;  %41 = vst.msk [vmem:[#allocation0 + $0x3] ss:$8 sm:$0xf0] %vm11_vm0, %v36_v6  }
  0x81   :  { %v28_v7 = vpop.permute.xlu0 %27  }
  0x82   :  { %31 = vst.msk [vmem:[#allocation0 + $0x2] ss:$8 sm:$0xf] %vm11_vm0, %v28_v7   ;;  %33 = vst.msk [vmem:[#allocation0 + $0x2] ss:$8 sm:$0xf0] %vm11_vm0, %v28_v7  }
  0x89   :  { %v45_v8 = vld [vmem:[#allocation0] sm:$0xf]  ;;  %v49_v9 = vld [vmem:[#allocation0 + $0x8] sm:$0xf]  ;;  %v54_v10 = vld [vmem:[#allocation0 + $0x10] sm:$0xf] }
  0x8a   :  { %47 = vst [vmem:[%s158_s1] sm:$0xf] %v45_v8  ;;  %96 = vst [vmem:[%s158_s1 + $0x4] sm:$0xf] %v49_v9  ;;  %v60_v11 = vld [vmem:[#allocation0 + $0x18] sm:$0xf] }
  0x8b   :  { %97 = vst [vmem:[%s158_s1 + $0x8] sm:$0xf] %v54_v10  ;;  %v66_v12 = vld [vmem:[#allocation0 + $0x20] sm:$0xf]  ;;  %v72_v13 = vld [vmem:[#allocation0 + $0x28] sm:$0xf] }
  0x8c   :  { %98 = vst [vmem:[%s158_s1 + $0xc] sm:$0xf] %v60_v11  ;;  %99 = vst [vmem:[%s158_s1 + $0x10] sm:$0xf] %v66_v12  ;;  %v78_v14 = vld [vmem:[#allocation0 + $0x30] sm:$0xf] }
  0x8d   :  { %100 = vst [vmem:[%s158_s1 + $0x14] sm:$0xf] %v72_v13  ;;  %v84_v15 = vld [vmem:[#allocation0 + $0x38] sm:$0xf]  ;;  %101 = vst [vmem:[%s158_s1 + $0x18] sm:$0xf] %v78_v14 }
  0x8e   :  { %102 = vst [vmem:[%s158_s1 + $0x1c] sm:$0xf] %v84_v15 }

// kernel: spectral_conv2d_fast.1
= control target key start
LH: loop header
LB: loop body
LE: loop exit
PB: predicated region body
PF: predicated region fallthrough
CT: control target
= control target key end

     0   :  { %s1272_s18 = smov 0   ;;  %s1274_s19 = smov 0   ;;  %s1459_s0 = inlined_call_operand.vmem [shape: f32[2,4,2,128], index: 0, kind: input, shape index: {}]   ;;  %s1460_s1 = inlined_call_operand.vmem [shape: f32[2,4,2,128], index: 1, kind: input, shape index: {}]   ;;  %s1461_s2 = inlined_call_operand.vmem [shape: f32[2,4,4,128], index: 2, kind: input, shape index: {}]   ;;  %s1462_s3 = inlined_call_operand.vmem [shape: f32[2,4,4,128], index: 3, kind: input, shape index: {}]   ;;  %s1463_s4 = inlined_call_operand.vmem [shape: f32[2,2,4,128], index: 4, kind: output, shape index: {0}]   ;;  %s1464_s5 = inlined_call_operand.vmem [shape: f32[2,2,4,128], index: 5, kind: output, shape index: {1}]  }
   0x1   :  { %s1276_s20 = smov 0  }
   0x2 LB: > { %s42_s21 = sadd.s32 1, %s1235_s19  ;;  %p1151_p0 = scmp.ge.s32.totalorder %s1239_s20, 1  ;;  %s1239_s20 = sphi %s1276_s20, %s16_s20   ;;  %s1235_s19 = sphi %s1274_s19, %s1466_s19   ;;  %s1231_s18 = sphi %s1272_s18, %s1465_s18  }
   0x3   : > { %p44_p1 = scmp.ge.s32.totalorder %s42_s21, 2  ;;  %p298_p2 = scmp.lt.s32.totalorder %s1239_s20, 3 }
   0x5   : > { %s1468_s21 = smov (%p44_p1, %s42_s21), 0  ;;  %p299_p3 = pnand %p1151_p0, %p298_p2 }
   0x6   : > { %p390_p4 = scmp.lt.s32.totalorder (!%p299_p3), %s1231_s18, 1  ;;  %v479_v0 = vlaneseq (!%p299_p3)  ;;  %v1241_v1 = vmov (!%p299_p3), 1966171168  }
   0x7   : > { %302 = sbr.rel (%p299_p3) target bundleno = 55 (0x37), region = 36  ;;  %v477_v2 = vunpack.c.l.s4 (!%p299_p3), %v1241_v1 }
   0x8   : > { %v480_v3 = vshrl.u32 (!%p299_p3), %v479_v0, 7 }
   0x9   : > { %v478_v4 = vunpack.c.0.s8 (!%p299_p3), %v477_v2 }
   0xa   : > { %v1317_v7 = vsub.s32 (!%p299_p3), 0, %v480_v3 }
   0xb   : > { %v1304_v5 = vsub.s32 (!%p299_p3), %v478_v4, %v480_v3 }
   0xe   : > { %s1470_s18 = smov (!%p390_p4, %s1231_s18), 1 }
   0xf   : > { %s1290_s22 = sshll.u32 %s1470_s18, 3  ;;  %s1188_s23 = sshll.u32 %s1470_s18, 4 }
  0x10   : > { %s1296_s26 = scalar_lea.vmem %s1459_s0, %s1290_s22  ;;  %s1302_s29 = scalar_lea.vmem %s1460_s1, %s1290_s22 }
  0x11   : > { %s1309_s7 = scalar_lea.vmem %s1461_s2, %s1188_s23  ;;  %s1314_s10 = scalar_lea.vmem %s1462_s3, %s1188_s23  ;;  %v1164_v6 = vld.sshfl [vmem:[%s1296_s26] sm:$0x11 pattern:$0x75316420] }
  0x12   : > { %v475_v8 = vcombine.high %v1164_v6, %v1164_v6  ;;  %v1320_v9 = vrot.slane %v1164_v6, %v1304_v5  ;;  %v1165_v10 = vld.sshfl [vmem:[%s1302_s29] sm:$0x11 pattern:$0x75316420]  ;;  %v1338_v20 = vld [vmem:[%s1309_s7 + $0x4] sm:$0xf]  ;;  %s1414_s13 = scalar_lea.vmem %s1463_s4, %s1290_s22  ;;  %s464_s16 = scalar_lea.vmem %s1464_s5, %s1290_s22 }
  0x13   : > { %v1324_v11 = vld [vmem:[%s1309_s7] sm:$0xf]  ;;  %v501_v12 = vcombine.high %v1165_v10, %v1165_v10  ;;  %v508_v13 = vrot.slane %v1165_v10, %v1304_v5  ;;  %v1347_v26 = vld [vmem:[%s1314_s10 + $0x4] sm:$0xf]  ;;  %v1357_v32 = vld [vmem:[%s1309_s7 + $0x8] sm:$0xf] }
  0x14   : > { %v1328_v14 = vld [vmem:[%s1314_s10] sm:$0xf]  ;;  %v1341_v21 = vrot.slane %v475_v8, %v1304_v5  ;;  %v1173_v27 = vld.sshfl [vmem:[%s1296_s26 + $0x4] sm:$0x11 pattern:$0x75316420]  ;;  %v657_v28 = vadd.f32 %v1347_v26, %v1338_v20 }
  0x15   : > { %v1167_v15 = vld.sshfl [vmem:[%s1296_s26 + $0x2] sm:$0x11 pattern:$0x75316420]  ;;  %v549_v16 = vadd.f32 %v1328_v14, %v1324_v11  ;;  %v520_v22 = vadd.f32 %v508_v13, %v1320_v9  ;;  %v553_v23 = vrot.slane %v508_v13, %v1317_v7  ;;  %v688_v29 = vcombine.high %v1173_v27, %v1173_v27  ;;  %v1364_v38 = vld [vmem:[%s1314_s10 + $0x8] sm:$0xf] }
  0x16   : > { %v580_v17 = vcombine.high %v1167_v15, %v1167_v15  ;;  %v1334_v18 = vrot.slane %v1167_v15, %v1304_v5  ;;  %v1169_v19 = vld.sshfl [vmem:[%s1302_s29 + $0x2] sm:$0x11 pattern:$0x75316420]  ;;  %v1353_v30 = vrot.slane %v1173_v27, %v1304_v5  ;;  %v515_v33 = vrot.slane %v501_v12, %v1304_v5  ;;  %v1375_v44 = vld [vmem:[%s1309_s7 + $0xc] sm:$0xf] }
  0x17   : > { %v607_v24 = vcombine.high %v1169_v19, %v1169_v19  ;;  %v614_v25 = vrot.slane %v1169_v19, %v1304_v5  ;;  %v1175_v31 = vld.sshfl [vmem:[%s1302_s29 + $0x4] sm:$0x11 pattern:$0x75316420]  ;;  %v527_v34 = vrot.slane %v520_v22, %v1317_v7  ;;  %v560_v35 = vmul.f32 %v553_v23, %v549_v16  ;;  %v1183_v50 = vld [vmem:[%s1314_s10 + $0xc] sm:$0xf] }
  0x18   : > { %v1179_v39 = vld.sshfl [vmem:[%s1296_s26 + $0x6] sm:$0x11 pattern:$0x75316420]  ;;  %v722_v40 = vrot.slane %v1175_v31, %v1304_v5  ;;  %v765_v41 = vadd.f32 %v1364_v38, %v1357_v32  ;;  %v521_v45 = vadd.f32 %v515_v33, %v1341_v21  ;;  %v873_v53 = vadd.f32 %v1183_v50, %v1375_v44 }
  0x19   : > { %v628_v36 = vadd.f32 %v614_v25, %v1334_v18  ;;  %v661_v37 = vrot.slane %v614_v25, %v1317_v7  ;;  %v1371_v42 = vrot.slane %v1179_v39, %v1304_v5  ;;  %v1181_v43 = vld.sshfl [vmem:[%s1302_s29 + $0x6] sm:$0x11 pattern:$0x75316420]  ;;  %v1379_v46 = vmul.f32 %v527_v34, %v1324_v11 }
  0x1a   : > { %v830_v49 = vrot.slane %v1181_v43, %v1304_v5  ;;  %v736_v51 = vadd.f32 %v722_v40, %v1353_v30  ;;  %v769_v52 = vrot.slane %v722_v40, %v1317_v7  ;;  %v531_v54 = vrot.slane %v521_v45, %v1317_v7 }
  0x1b   : > { %v635_v47 = vrot.slane %v628_v36, %v1317_v7  ;;  %v668_v48 = vmul.f32 %v661_v37, %v657_v28  ;;  %v562_v55 = vsub.f32 %v1379_v46, %v560_v35  ;;  %v557_v62 = vrot.slane %v515_v33, %v1317_v7 }
  0x1c   : > { %v844_v57 = vadd.f32 %v830_v49, %v1371_v42  ;;  %v877_v58 = vrot.slane %v830_v49, %v1317_v7  ;;  %v743_v59 = vrot.slane %v736_v51, %v1317_v7  ;;  %v776_v60 = vmul.f32 %v769_v52, %v765_v41 }
  0x1d   : > { %v642_v56 = vmul.f32 %v1338_v20, %v635_v47  ;;  %v1394_v61 = vmul.f32 %v531_v54, %v1324_v11  ;;  %v594_v2 = vrot.slane %v580_v17, %v1304_v5  ;;  %v561_v4 = vmul.f32 %v557_v62, %v549_v16 }
  0x1e   : > { %v851_v0 = vrot.slane %v844_v57, %v1317_v7  ;;  %v884_v1 = vmul.f32 %v877_v58, %v873_v53  ;;  %v750_v3 = vmul.f32 %v1357_v32, %v743_v59  ;;  %v621_v6 = vrot.slane %v607_v24, %v1304_v5 }
  0x1f   : > { %v670_v63 = vsub.f32 %v642_v56, %v668_v48  ;;  %v702_v8 = vrot.slane %v688_v29, %v1304_v5  ;;  %v715_v13 = vcombine.high %v1175_v31, %v1175_v31  ;;  %v796_v15 = vcombine.high %v1179_v39, %v1179_v39 }
  0x20   : > { %v858_v12 = vmul.f32 %v1375_v44, %v851_v0  ;;  %v778_v19 = vsub.f32 %v750_v3, %v776_v60  ;;  %v563_v22 = vsub.f32 %v1394_v61, %v561_v4  ;;  %v629_v23 = vadd.f32 %v621_v6, %v594_v2 }
  0x21   : > { %v672_v10 = vadd.f32 %v670_v63, %v562_v55  ;;  %v665_v25 = vrot.slane %v621_v6, %v1317_v7  ;;  %v729_v27 = vrot.slane %v715_v13, %v1304_v5  ;;  %v810_v16 = vrot.slane %v796_v15, %v1304_v5 }
  0x22   : > { %v886_v17 = vsub.f32 %v858_v12, %v884_v1  ;;  %v823_v24 = vcombine.high %v1181_v43, %v1181_v43  ;;  %v639_v29 = vrot.slane %v629_v23, %v1317_v7  ;;  %v536_v31 = vsub.f32 %v1328_v14, %v1324_v11 }
  0x23   : > { %v780_v33 = vadd.f32 %v778_v19, %v672_v10  ;;  %v669_v34 = vmul.f32 %v665_v25, %v657_v28  ;;  %v737_v35 = vadd.f32 %v729_v27, %v702_v8  ;;  %v773_v36 = vrot.slane %v729_v27, %v1317_v7 }
  0x24   : > { %v837_v37 = vrot.slane %v823_v24, %v1304_v5  ;;  %v540_v39 = vrot.slane %v1320_v9, %v1317_v7  ;;  %v643_v28 = vmul.f32 %v1338_v20, %v639_v29  ;;  %v644_v11 = vsub.f32 %v1347_v26, %v1338_v20 }
  0x25   : > { %v888_v40 = vadd.f32 %v886_v17, %v780_v33  ;;  %v648_v14 = vrot.slane %v1334_v18, %v1317_v7  ;;  %v747_v43 = vrot.slane %v737_v35, %v1317_v7  ;;  %v777_v45 = vmul.f32 %v773_v36, %v765_v41 }
  0x26   : > { %v845_v47 = vadd.f32 %v837_v37, %v810_v16  ;;  %v881_v48 = vrot.slane %v837_v37, %v1317_v7  ;;  %v671_v5 = vsub.f32 %v643_v28, %v669_v34  ;;  %v547_v49 = vmul.f32 %v540_v39, %v536_v31 }
  0x27   : > { %894 = vst [vmem:[%s1414_s13] sm:$0xf] %v888_v40  ;;  %v655_v51 = vmul.f32 %v648_v14, %v644_v11  ;;  %v752_v9 = vsub.f32 %v1364_v38, %v1357_v32  ;;  %v751_v52 = vmul.f32 %v1357_v32, %v747_v43  ;;  %v756_v18 = vrot.slane %v1353_v30, %v1317_v7 }
  0x28   : > { %v855_v20 = vrot.slane %v845_v47, %v1317_v7  ;;  %v885_v26 = vmul.f32 %v881_v48, %v873_v53  ;;  %v673_v54 = vadd.f32 %v671_v5, %v563_v22  ;;  %v566_v41 = vadd.f32 %v547_v49, %v1379_v46 }
  0x29   : > { %v674_v55 = vadd.f32 %v655_v51, %v642_v56  ;;  %v860_v57 = vsub.f32 %v1183_v50, %v1375_v44  ;;  %v779_v58 = vsub.f32 %v751_v52, %v777_v45  ;;  %v763_v60 = vmul.f32 %v756_v18, %v752_v9 }
  0x2a   : > { %v859_v59 = vmul.f32 %v1375_v44, %v855_v20  ;;  %v864_v38 = vrot.slane %v1371_v42, %v1317_v7  ;;  %v544_v53 = vrot.slane %v1341_v21, %v1317_v7  ;;  %v652_v30 = vrot.slane %v594_v2, %v1317_v7 }
  0x2b   : > { %v676_v32 = vadd.f32 %v674_v55, %v566_v41  ;;  %v760_v62 = vrot.slane %v702_v8, %v1317_v7  ;;  %v781_v46 = vadd.f32 %v779_v58, %v673_v54  ;;  %v782_v50 = vadd.f32 %v763_v60, %v750_v3 }
  0x2c   : > { %v887_v56 = vsub.f32 %v859_v59, %v885_v26  ;;  %v871_v63 = vmul.f32 %v864_v38, %v860_v57  ;;  %v548_v0 = vmul.f32 %v544_v53, %v536_v31  ;;  %v656_v44 = vmul.f32 %v652_v30, %v644_v11 }
  0x2d   : > { %v764_v1 = vmul.f32 %v760_v62, %v752_v9  ;;  %v868_v4 = vrot.slane %v810_v16, %v1317_v7  ;;  %v784_v6 = vadd.f32 %v782_v50, %v676_v32 }
  0x2e   : > { %v889_v42 = vadd.f32 %v887_v56, %v781_v46  ;;  %v890_v10 = vadd.f32 %v871_v63, %v858_v12  ;;  %v567_v21 = vadd.f32 %v548_v0, %v1394_v61  ;;  %v675_v2 = vadd.f32 %v656_v44, %v643_v28 }
  0x2f   : > { %v783_v8 = vadd.f32 %v764_v1, %v751_v52  ;;  %v872_v13 = vmul.f32 %v868_v4, %v860_v57 }
  0x30   : > { %895 = vst [vmem:[%s1414_s13 + $0x4] sm:$0xf] %v889_v42  ;;  %v892_v3 = vadd.f32 %v890_v10, %v784_v6  ;;  %v677_v15 = vadd.f32 %v675_v2, %v567_v21 }
  0x31   : > { %v891_v19 = vadd.f32 %v872_v13, %v859_v59 }
  0x32   : > { %896 = vst [vmem:[%s464_s16] sm:$0xf] %v892_v3  ;;  %v785_v22 = vadd.f32 %v783_v8, %v677_v15 }
  0x34   : > { %v893_v23 = vadd.f32 %v891_v19, %v785_v22 }
  0x36   : > { %897 = vst [vmem:[%s464_s16 + $0x4] sm:$0xf] %v893_v23 }
  0x37 PF: > { %s16_s20 = sadd.s32 1, %s1239_s20   ;;  %s1465_s18 = smov %s1235_s19 }
  0x38   : > { %p13_p5 = scmp.ge.s32.totalorder %s16_s20, 4   ;;  %s1466_s19 = smov %s1468_s21 }
  0x3a   :  { %15 = sbr.rel (!%p13_p5) target bundleno = 2 (0x2), region = 99 }

// kernel: reverse.0
= control target key start
LH: loop header
LB: loop body
LE: loop exit
PB: predicated region body
PF: predicated region fallthrough
CT: control target
= control target key end

     0   :  { %v71_v3 = vlaneseq  ;;  %v64_v9 = vld [vmem:[#allocation0 + $0x7] ss:$-1 sm:$0xff]  ;;  %v78_v12 = vld [vmem:[#allocation0 + $0x17] ss:$-1 sm:$0xff]  ;;  %s329_s0 = inlined_call_operand.vmem [shape: f32[2,4,16,7], index: 0, kind: input, shape index: {}]   ;;  %s330_s1 = inlined_call_operand.vmem [shape: f32[2,4,16,7], index: 1, kind: output, shape index: {}]  }
   0x1   :  { %v44_v0 = vld [vmem:[%s329_s0] sm:$0xff]  ;;  %v46_v1 = vld [vmem:[%s329_s0 + $0x8] sm:$0xff]  ;;  %v48_v2 = vld [vmem:[%s329_s0 + $0x10] sm:$0xff]  ;;  %v65_v10 = vrot.slane %v64_v9, 1  ;;  %v79_v14 = vrot.slane %v78_v12, 1 }
   0x2   :  { %45 = vst [vmem:[#allocation0 + $0x8] sm:$0xff] %v44_v0  ;;  %47 = vst [vmem:[#allocation0 + $0x18] sm:$0xff] %v46_v1  ;;  %v50_v4 = vld [vmem:[%s329_s0 + $0x18] sm:$0xff]  ;;  %v52_v5 = vld [vmem:[%s329_s0 + $0x20] sm:$0xff]  ;;  %v72_v11 = vshrl.u32 %v71_v3, 7 }
   0x3   :  { %49 = vst [vmem:[#allocation0 + $0x28] sm:$0xff] %v48_v2  ;;  %v54_v6 = vld [vmem:[%s329_s0 + $0x28] sm:$0xff]  ;;  %51 = vst [vmem:[#allocation0 + $0x38] sm:$0xff] %v50_v4  ;;  %v56_v7 = vld [vmem:[%s329_s0 + $0x30] sm:$0xff] }
   0x4   :  { %53 = vst [vmem:[#allocation0 + $0x48] sm:$0xff] %v52_v5  ;;  %55 = vst [vmem:[#allocation0 + $0x58] sm:$0xff] %v54_v6  ;;  %v58_v8 = vld [vmem:[%s329_s0 + $0x38] sm:$0xff]  ;;  %v92_v13 = vld [vmem:[#allocation0 + $0x27] ss:$-1 sm:$0xff]  ;;  %vm73_vm0 = vcmp.lt.s32.totalorder %v72_v11, 7 }
   0x5   :  { %57 = vst [vmem:[#allocation0 + $0x68] sm:$0xff] %v56_v7  ;;  %59 = vst [vmem:[#allocation0 + $0x78] sm:$0xff] %v58_v8  ;;  %v93_v15 = vrot.slane %v92_v13, 1  ;;  %v106_v16 = vld [vmem:[#allocation0 + $0x37] ss:$-1 sm:$0xff] }
   0x6   :  { %66 = vst [vmem:[#allocation1] sm:$0xff] %v65_v10  ;;  %v107_v17 = vrot.slane %v106_v16, 1  ;;  %v120_v18 = vld [vmem:[#allocation0 + $0x47] ss:$-1 sm:$0xff]  ;;  %v134_v19 = vld [vmem:[#allocation0 + $0x57] ss:$-1 sm:$0xff] }
   0x7   :  { %80 = vst [vmem:[#allocation1 + $0x8] sm:$0xff] %v79_v14  ;;  %94 = vst [vmem:[#allocation1 + $0x10] sm:$0xff] %v93_v15  ;;  %v121_v20 = vrot.slane %v120_v18, 1  ;;  %v135_v21 = vrot.slane %v134_v19, 1  ;;  %v148_v22 = vld [vmem:[#allocation0 + $0x67] ss:$-1 sm:$0xff] }
   0x8   :  { %v162_v23 = vld [vmem:[#allocation0 + $0x77] ss:$-1 sm:$0xff]  ;;  %108 = vst [vmem:[#allocation1 + $0x18] sm:$0xff] %v107_v17  ;;  %v149_v24 = vrot.slane %v148_v22, 1 }
   0x9   :  { %v163_v25 = vrot.slane %v162_v23, 1  ;;  %v69_v26 = vld [vmem:[#allocation0 + $0xf] ss:$-1 sm:$0xff]  ;;  %v83_v27 = vld [vmem:[#allocation0 + $0x1f] ss:$-1 sm:$0xff]  ;;  %122 = vst [vmem:[#allocation1 + $0x20] sm:$0xff] %v121_v20 }
   0xa   :  { %v97_v28 = vld [vmem:[#allocation0 + $0x2f] ss:$-1 sm:$0xff]  ;;  %136 = vst [vmem:[#allocation1 + $0x28] sm:$0xff] %v135_v21  ;;  %v70_v29 = vrot.slane %v69_v26, 1  ;;  %v84_v30 = vrot.slane %v83_v27, 1  ;;  %150 = vst [vmem:[#allocation1 + $0x30] sm:$0xff] %v149_v24 }
   0xb   :  { %v98_v31 = vrot.slane %v97_v28, 1  ;;  %v111_v32 = vld [vmem:[#allocation0 + $0x3f] ss:$-1 sm:$0xff]  ;;  %164 = vst [vmem:[#allocation1 + $0x38] sm:$0xff] %v163_v25  ;;  %v125_v34 = vld [vmem:[#allocation0 + $0x4f] ss:$-1 sm:$0xff] }
   0xc   :  { %v112_v33 = vrot.slane %v111_v32, 1  ;;  %v139_v35 = vld [vmem:[#allocation0 + $0x5f] ss:$-1 sm:$0xff]  ;;  %74 = vst.msk [vmem:[#allocation1] sm:$0xff] %vm73_vm0, %v70_v29  ;;  %88 = vst.msk [vmem:[#allocation1 + $0x8] sm:$0xff] %vm73_vm0, %v84_v30  ;;  %v126_v36 = vrot.slane %v125_v34, 1 }
   0xd   :  { %102 = vst.msk [vmem:[#allocation1 + $0x10] sm:$0xff] %vm73_vm0, %v98_v31  ;;  %v140_v37 = vrot.slane %v139_v35, 1  ;;  %v153_v38 = vld [vmem:[#allocation0 + $0x6f] ss:$-1 sm:$0xff]  ;;  %v167_v39 = vld [vmem:[#allocation0 + $0x7f] ss:$-1 sm:$0xff] }
   0xe   :  { %116 = vst.msk [vmem:[#allocation1 + $0x18] sm:$0xff] %vm73_vm0, %v112_v33  ;;  %v154_v40 = vrot.slane %v153_v38, 1  ;;  %v168_v41 = vrot.slane %v167_v39, 1  ;;  %130 = vst.msk [vmem:[#allocation1 + $0x20] sm:$0xff] %vm73_vm0, %v126_v36 }
   0xf   :  { %144 = vst.msk [vmem:[#allocation1 + $0x28] sm:$0xff] %vm73_vm0, %v140_v37 }
  0x10   :  { %158 = vst.msk [vmem:[#allocation1 + $0x30] sm:$0xff] %vm73_vm0, %v154_v40  ;;  %172 = vst.msk [vmem:[#allocation1 + $0x38] sm:$0xff] %vm73_vm0, %v168_v41 }
  0x13   :  { %v214_v42 = vld [vmem:[#allocation1] sm:$0xff]  ;;  %v216_v43 = vld [vmem:[#allocation1 + $0x8] sm:$0xff] }
  0x14   :  { %v218_v44 = vld [vmem:[#allocation1 + $0x10] sm:$0xff]  ;;  %215 = vst [vmem:[%s330_s1] sm:$0xff] %v214_v42  ;;  %217 = vst [vmem:[%s330_s1 + $0x8] sm:$0xff] %v216_v43 }
  0x15   :  { %219 = vst [vmem:[%s330_s1 + $0x10] sm:$0xff] %v218_v44  ;;  %v220_v45 = vld [vmem:[#allocation1 + $0x18] sm:$0xff]  ;;  %v222_v46 = vld [vmem:[#allocation1 + $0x20] sm:$0xff] }
  0x16   :  { %221 = vst [vmem:[%s330_s1 + $0x18] sm:$0xff] %v220_v45  ;;  %v224_v47 = vld [vmem:[#allocation1 + $0x28] sm:$0xff]  ;;  %223 = vst [vmem:[%s330_s1 + $0x20] sm:$0xff] %v222_v46 }
  0x17   :  { %225 = vst [vmem:[%s330_s1 + $0x28] sm:$0xff] %v224_v47  ;;  %v226_v48 = vld [vmem:[#allocation1 + $0x30] sm:$0xff]  ;;  %v228_v49 = vld [vmem:[#allocation1 + $0x38] sm:$0xff] }
  0x18   :  { %227 = vst [vmem:[%s330_s1 + $0x30] sm:$0xff] %v226_v48  ;;  %229 = vst [vmem:[%s330_s1 + $0x38] sm:$0xff] %v228_v49 }

</bundles_post_ra>
